<compile_context>
chip_gen: v6e
topology: v6e:2x2x1
jax: 0.10.0
libtpu: 0.0.40
codegen_flags: <defaults>
</compile_context>

<pallas_src>
import functools

import jax
import jax.numpy as jnp
from jax.experimental import pallas as pl
from jax.experimental.pallas import tpu as pltpu


_TARGET_BLOCK_ELEMS = 512 * 1024          # ~2 MiB of f32 per pipelined block
_VMEM_LIMIT_BYTES = 32 * 1024 * 1024      # safe on v5e/v6e (128 MiB) and v7x (64 MiB)


# ---------------------------------------------------------------------------
# Kernels
# ---------------------------------------------------------------------------
def _ln_rows_kernel(x_ref, w_ref, b_ref, o_ref, *, eps):
    """Row-wise LayerNorm; x_ref: (TILE_R, C) with C on lanes, w/b: (1, C)."""
    x = x_ref[...].astype(jnp.float32)
    mean = jnp.mean(x, axis=-1, keepdims=True)
    xc = x - mean
    var = jnp.mean(xc * xc, axis=-1, keepdims=True)   # biased variance (matches torch)
    y = xc * jax.lax.rsqrt(var + eps)
    y = y * w_ref[...] + b_ref[...]
    o_ref[...] = y.astype(o_ref.dtype)


def _ln_packed_kernel(x_ref, w_ref, b_ref, o_ref, *, eps, c):
    """Lane-dense LayerNorm for small power-of-two C.

    x_ref: (TILE_M, 128); each aligned group of `c` lanes is one logical row.
    w_ref/b_ref: (1, 128) = weight/bias tiled 128//c times.
    """
    x = x_ref[...].astype(jnp.float32)
    tile_m, lanes = x.shape
    lane = jax.lax.broadcasted_iota(jnp.int32, (tile_m, lanes), 1)

    # XOR-butterfly pairing masks.  Selecting against a rolled iota makes the
    # reduction correct regardless of pltpu.roll's rotation direction.
    steps = []
    s = 1
    while s < c:
        rolled_lane = pltpu.roll(lane, shift=s, axis=1)
        steps.append((s, rolled_lane == (lane ^ s)))
        s *= 2

    def seg_sum(v):
        # All-reduce within each aligned group of `c` lanes (c is a power of 2).
        for shift, use_a in steps:
            a = pltpu.roll(v, shift=shift, axis=1)
            b = pltpu.roll(v, shift=lanes - shift, axis=1)
            v = v + jnp.where(use_a, a, b)
        return v

    inv_c = jnp.float32(1.0 / c)
    mean = seg_sum(x) * inv_c
    xc = x - mean
    var = seg_sum(xc * xc) * inv_c
    y = xc * jax.lax.rsqrt(var + eps)
    y = y * w_ref[...] + b_ref[...]
    o_ref[...] = y.astype(o_ref.dtype)


def _ln_cf_kernel(x_ref, w_ref, b_ref, o_ref, *, eps):
    """channels_first LayerNorm; x_ref: (BN, C, T) — C on sublanes, spatial on lanes."""
    x = x_ref[...].astype(jnp.float32)
    mean = jnp.mean(x, axis=1, keepdims=True)
    xc = x - mean
    var = jnp.mean(xc * xc, axis=1, keepdims=True)
    y = xc * jax.lax.rsqrt(var + eps)
    y = y * w_ref[...] + b_ref[...]              # (1, C, 1) broadcasts
    o_ref[...] = y.astype(o_ref.dtype)


# ---------------------------------------------------------------------------
# Wrappers
# ---------------------------------------------------------------------------
def _rows_tile(R, C, target_elems):
    c_pad = ((C + 127) // 128) * 128             # lane padding of the VMEM tile
    t = max(8, (target_elems // c_pad) // 8 * 8)
    return R if t >= R else t


def _layernorm_rows(x2d, weight_f32, bias_f32, eps, target_elems):
    R, C = x2d.shape
    tile_r = _rows_tile(R, C, target_elems)
    itemsize = x2d.dtype.itemsize
    return pl.pallas_call(
        functools.partial(_ln_rows_kernel, eps=eps),
        out_shape=jax.ShapeDtypeStruct((R, C), x2d.dtype),
        grid_spec=pltpu.PrefetchScalarGridSpec(
            num_scalar_prefetch=0,
            grid=(pl.cdiv(R, tile_r),),
            in_specs=[
                pl.BlockSpec((tile_r, C), lambda i: (i, 0)),
                pl.BlockSpec((1, C), lambda i: (0, 0)),
                pl.BlockSpec((1, C), lambda i: (0, 0)),
            ],
            out_specs=pl.BlockSpec((tile_r, C), lambda i: (i, 0)),
        ),
        compiler_params=pltpu.CompilerParams(
            dimension_semantics=("parallel",),
            vmem_limit_bytes=_VMEM_LIMIT_BYTES,
        ),
        cost_estimate=pl.CostEstimate(
            flops=int(8 * R * C),
            transcendentals=int(R),
            bytes_accessed=int(2 * R * C * itemsize),
        ),
    )(x2d, weight_f32.reshape(1, C), bias_f32.reshape(1, C))


def _layernorm_packed(x2d, weight_f32, bias_f32, eps, target_elems):
    R, C = x2d.shape
    L = 128
    G = L // C
    M = (R * C) // L
    xp = x2d.reshape(M, L)                        # free row-major reshape
    w_t = jnp.tile(weight_f32, G).reshape(1, L)   # w_t[l] = weight[l % C]
    b_t = jnp.tile(bias_f32, G).reshape(1, L)
    tile_m = max(8, (target_elems // L) // 8 * 8)
    if tile_m >= M:
        tile_m = M
    itemsize = x2d.dtype.itemsize
    out = pl.pallas_call(
        functools.partial(_ln_packed_kernel, eps=eps, c=C),
        out_shape=jax.ShapeDtypeStruct((M, L), x2d.dtype),
        grid_spec=pltpu.PrefetchScalarGridSpec(
            num_scalar_prefetch=0,
            grid=(pl.cdiv(M, tile_m),),
            in_specs=[
                pl.BlockSpec((tile_m, L), lambda i: (i, 0)),
                pl.BlockSpec((1, L), lambda i: (0, 0)),
                pl.BlockSpec((1, L), lambda i: (0, 0)),
            ],
            out_specs=pl.BlockSpec((tile_m, L), lambda i: (i, 0)),
        ),
        compiler_params=pltpu.CompilerParams(
            dimension_semantics=("parallel",),
            vmem_limit_bytes=_VMEM_LIMIT_BYTES,
        ),
        cost_estimate=pl.CostEstimate(
            flops=int(10 * R * C),
            transcendentals=int(R),
            bytes_accessed=int(2 * R * C * itemsize),
        ),
    )(xp, w_t, b_t)
    return out.reshape(R, C)


def _cf_blocks(N, C, HW, target_elems):
    max_lanes = max(1, target_elems // max(C, 1))
    if HW <= max_lanes:
        t = HW                                       # full spatial extent (always legal)
        bn = max(1, min(N, target_elems // max(1, C * HW)))
    else:
        t = max(128, (max_lanes // 128) * 128)       # lane tile, multiple of 128
        if t >= HW:
            t = HW
        bn = 1
    return bn, t


def _layernorm_cf(x, weight_f32, bias_f32, eps, target_elems):
    N, C, H, W = x.shape
    HW = H * W
    x3 = x.reshape(N, C, HW)                         # free reshape, no transpose
    bn, t = _cf_blocks(N, C, HW, target_elems)
    itemsize = x.dtype.itemsize
    out = pl.pallas_call(
        functools.partial(_ln_cf_kernel, eps=eps),
        out_shape=jax.ShapeDtypeStruct((N, C, HW), x.dtype),
        grid_spec=pltpu.PrefetchScalarGridSpec(
            num_scalar_prefetch=0,
            grid=(pl.cdiv(N, bn), pl.cdiv(HW, t)),
            in_specs=[
                pl.BlockSpec((bn, C, t), lambda i, j: (i, 0, j)),
                pl.BlockSpec((1, C, 1), lambda i, j: (0, 0, 0)),
                pl.BlockSpec((1, C, 1), lambda i, j: (0, 0, 0)),
            ],
            out_specs=pl.BlockSpec((bn, C, t), lambda i, j: (i, 0, j)),
        ),
        compiler_params=pltpu.CompilerParams(
            dimension_semantics=("parallel", "parallel"),
            vmem_limit_bytes=_VMEM_LIMIT_BYTES,
        ),
        cost_estimate=pl.CostEstimate(
            flops=int(8 * N * C * HW),
            transcendentals=int(N * HW),
            bytes_accessed=int(2 * N * C * HW * itemsize),
        ),
    )(x3, weight_f32.reshape(1, C, 1), bias_f32.reshape(1, C, 1))
    return out.reshape(N, C, H, W)


def layer_norm(x, weight, bias, eps=1e-6, data_format="channels_last",
               block_elems=_TARGET_BLOCK_ELEMS):
    """Matches util.LayerNorm.forward (eps default 1e-6, like the reference module)."""
    w = weight.astype(jnp.float32)
    b = bias.astype(jnp.float32)
    if data_format == "channels_last":
        C = x.shape[-1]
        shape = x.shape
        x2 = x.reshape(-1, C)
        R = x2.shape[0]
        if 0 < C <= 64 and 128 % C == 0 and (R * C) % 128 == 0:
            y = _layernorm_packed(x2, w, b, eps, block_elems)
        else:
            # TODO(synk): for very large C (>= 8-16K) add a split-C online
            # mean/var accumulator to shrink the per-block VMEM footprint.
            y = _layernorm_rows(x2, w, b, eps, block_elems)
        return y.reshape(shape)
    elif data_format == "channels_first":
        return _layernorm_cf(x, w, b, eps, block_elems)
    else:
        raise NotImplementedError


# ---------------------------------------------------------------------------
# Reference + test
# ---------------------------------------------------------------------------
def _ref_layer_norm(x, weight, bias, eps, data_format):
    if data_format == "channels_last":
        mean = jnp.mean(x, axis=-1, keepdims=True)
        var = jnp.mean((x - mean) ** 2, axis=-1, keepdims=True)
        return (x - mean) / jnp.sqrt(var + eps) * weight + bias
    else:
        mean = jnp.mean(x, axis=1, keepdims=True)
        var = jnp.mean((x - mean) ** 2, axis=1, keepdims=True)
        xn = (x - mean) / jnp.sqrt(var + eps)
        return weight[:, None, None] * xn + bias[:, None, None]


if __name__ == "__main__":
    key = jax.random.PRNGKey(0)
    k1, k2, k3, k4, k5, k6, k7 = jax.random.split(key, 7)

    C = 4
    eps = 1e-6
    weight = jax.random.normal(k1, (C,), jnp.float32)
    bias = jax.random.normal(k2, (C,), jnp.float32)

    # channels_first (N, C, H, W): transpose-free kernel, C on sublanes.
    x_cf = jax.random.normal(k3, (2, C, 16, 16), jnp.float32)
    y_cf = jax.block_until_ready(
        layer_norm(x_cf, weight, bias, eps, data_format="channels_first"))
    ref_cf = _ref_layer_norm(x_cf, weight, bias, eps, "channels_first")
    assert y_cf.shape == x_cf.shape and y_cf.dtype == x_cf.dtype
    assert jnp.allclose(y_cf, ref_cf, atol=1e-5, rtol=1e-5)

    # channels_last (N, H, W, C) with C=4: lane-dense packed kernel.
    x_cl = jax.random.normal(k4, (2, 16, 16, C), jnp.float32)
    y_cl = jax.block_until_ready(
        layer_norm(x_cl, weight, bias, eps, data_format="channels_last"))
    ref_cl = _ref_layer_norm(x_cl, weight, bias, eps, "channels_last")
    assert y_cl.shape == x_cl.shape and y_cl.dtype == x_cl.dtype
    assert jnp.allclose(y_cl, ref_cl, atol=1e-5, rtol=1e-5)

    # channels_last fallback row kernel (C=6 not a divisor of 128), with a small
    # block override so the grid has a masked partial last block (no pad/slice).
    C2 = 6
    w2 = jax.random.normal(k5, (C2,), jnp.float32)
    b2 = jax.random.normal(k6, (C2,), jnp.float32)
    x2 = jax.random.normal(k7, (2, 5, 5, C2), jnp.float32)
    y2 = jax.block_until_ready(
        layer_norm(x2, w2, b2, eps, data_format="channels_last", block_elems=1024))
    ref2 = _ref_layer_norm(x2, w2, b2, eps, "channels_last")
    assert jnp.allclose(y2, ref2, atol=1e-5, rtol=1e-5)

    # channels_first with a partial spatial (lane) block.
    x3 = jax.random.normal(jax.random.PRNGKey(1), (1, C, 15, 20), jnp.float32)
    y3 = jax.block_until_ready(
        layer_norm(x3, weight, bias, eps, data_format="channels_first", block_elems=512))
    ref3 = _ref_layer_norm(x3, weight, bias, eps, "channels_first")
    assert jnp.allclose(y3, ref3, atol=1e-5, rtol=1e-5)

    print("KERNEL_OK")
</pallas_src>

<mosaic_0001>
module attributes {stable_mosaic.version = 11 : i64} {
  func.func @_ln_cf_kernel(%arg0: i32, %arg1: i32, %arg2: memref<2x4x256xf32, #tpu.memory_space<vmem>>, %arg3: memref<1x4x1xf32, #tpu.memory_space<vmem>>, %arg4: memref<1x4x1xf32, #tpu.memory_space<vmem>>, %arg5: memref<2x4x256xf32, #tpu.memory_space<vmem>>) attributes {dimension_semantics = [#tpu.dimension_semantics<parallel>, #tpu.dimension_semantics<parallel>], iteration_bounds = array<i64: 1, 1>, scalar_prefetch = 0 : i64, scratch_operands = 0 : i64, tpu.core_type = #tpu.core_type<tc>, window_params = [{transform_indices = @transform_0, window_bounds = array<i64: 2, 4, 256>}, {pipeline_mode = #tpu.pipeline_mode<synchronous>, transform_indices = @transform_1, window_bounds = array<i64: 1, 4, 1>}, {pipeline_mode = #tpu.pipeline_mode<synchronous>, transform_indices = @transform_2, window_bounds = array<i64: 1, 4, 1>}, {transform_indices = @transform_3, window_bounds = array<i64: 2, 4, 256>}]} {
    %c0 = arith.constant 0 : index
    %c0_0 = arith.constant 0 : index
    %c0_1 = arith.constant 0 : index
    %0 = vector.load %arg2[%c0, %c0_0, %c0_1] : memref<2x4x256xf32, #tpu.memory_space<vmem>>, vector<2x4x256xf32>
    %cst = arith.constant dense<0.000000e+00> : vector<2x256xf32>
    %1 = vector.multi_reduction <add>, %0, %cst [1] : vector<2x4x256xf32> to vector<2x256xf32>
    %2 = vector.shape_cast %1 : vector<2x256xf32> to vector<2x1x256xf32>
    %cst_2 = arith.constant 4.000000e+00 : f32
    %3 = vector.broadcast %cst_2 : f32 to vector<2x1x256xf32>
    %4 = arith.divf %2, %3 : vector<2x1x256xf32>
    %5 = vector.broadcast %4 : vector<2x1x256xf32> to vector<2x4x256xf32>
    %6 = arith.subf %0, %5 : vector<2x4x256xf32>
    %7 = arith.mulf %6, %6 : vector<2x4x256xf32>
    %cst_3 = arith.constant dense<0.000000e+00> : vector<2x256xf32>
    %8 = vector.multi_reduction <add>, %7, %cst_3 [1] : vector<2x4x256xf32> to vector<2x256xf32>
    %9 = vector.shape_cast %8 : vector<2x256xf32> to vector<2x1x256xf32>
    %cst_4 = arith.constant 4.000000e+00 : f32
    %10 = vector.broadcast %cst_4 : f32 to vector<2x1x256xf32>
    %11 = arith.divf %9, %10 : vector<2x1x256xf32>
    %cst_5 = arith.constant 9.99999997E-7 : f32
    %12 = vector.broadcast %cst_5 : f32 to vector<2x1x256xf32>
    %13 = arith.addf %11, %12 : vector<2x1x256xf32>
    %14 = math.rsqrt %13 : vector<2x1x256xf32>
    %15 = vector.broadcast %14 : vector<2x1x256xf32> to vector<2x4x256xf32>
    %16 = arith.mulf %6, %15 : vector<2x4x256xf32>
    %c0_6 = arith.constant 0 : index
    %c0_7 = arith.constant 0 : index
    %c0_8 = arith.constant 0 : index
    %17 = vector.load %arg3[%c0_6, %c0_7, %c0_8] : memref<1x4x1xf32, #tpu.memory_space<vmem>>, vector<1x4x1xf32>
    %18 = vector.broadcast %17 : vector<1x4x1xf32> to vector<2x4x256xf32>
    %19 = arith.mulf %16, %18 : vector<2x4x256xf32>
    %c0_9 = arith.constant 0 : index
    %c0_10 = arith.constant 0 : index
    %c0_11 = arith.constant 0 : index
    %20 = vector.load %arg4[%c0_9, %c0_10, %c0_11] : memref<1x4x1xf32, #tpu.memory_space<vmem>>, vector<1x4x1xf32>
    %21 = vector.broadcast %20 : vector<1x4x1xf32> to vector<2x4x256xf32>
    %22 = arith.addf %19, %21 : vector<2x4x256xf32>
    %c0_12 = arith.constant 0 : index
    %c0_13 = arith.constant 0 : index
    %c0_14 = arith.constant 0 : index
    %23 = vector.load %arg5[%c0_12, %c0_13, %c0_14] : memref<2x4x256xf32, #tpu.memory_space<vmem>>, vector<2x4x256xf32>
    tpu.vector_store %arg5[%c0_12, %c0_13, %c0_14], %22 {strides = array<i32>} : memref<2x4x256xf32, #tpu.memory_space<vmem>>, vector<2x4x256xf32>,
    return
  }
  func.func @transform_0(%arg0: i32, %arg1: i32) -> (i32, i32, i32) {
    %c0_i32 = arith.constant 0 : i32
    %c0_i32_0 = arith.constant 0 : i32
    return %arg0, %c0_i32, %arg1 : i32, i32, i32
  }
  func.func @transform_1(%arg0: i32, %arg1: i32) -> (i32, i32, i32) {
    %c0_i32 = arith.constant 0 : i32
    %c0_i32_0 = arith.constant 0 : i32
    %c0_i32_1 = arith.constant 0 : i32
    %c0_i32_2 = arith.constant 0 : i32
    return %c0_i32, %c0_i32_0, %c0_i32_1 : i32, i32, i32
  }
  func.func @transform_2(%arg0: i32, %arg1: i32) -> (i32, i32, i32) {
    %c0_i32 = arith.constant 0 : i32
    %c0_i32_0 = arith.constant 0 : i32
    %c0_i32_1 = arith.constant 0 : i32
    %c0_i32_2 = arith.constant 0 : i32
    return %c0_i32, %c0_i32_0, %c0_i32_1 : i32, i32, i32
  }
  func.func @transform_3(%arg0: i32, %arg1: i32) -> (i32, i32, i32) {
    %c0_i32 = arith.constant 0 : i32
    %c0_i32_0 = arith.constant 0 : i32
    return %arg0, %c0_i32, %arg1 : i32, i32, i32
  }
}

</mosaic_0001>

<bundles_post_ra>
// kernel: tpu_custom_call.1
= control target key start
LH: loop header
LB: loop body
LE: loop exit
PB: predicated region body
PF: predicated region fallthrough
CT: control target
= control target key end

     0   :  { %8 = vsyncpa [#allocation3], 0  ;;  %s301_s0 = inlined_call_operand.hbm [shape: f32[2,4,256], index: 0, kind: input, shape index: {}]   ;;  %s302_s1 = inlined_call_operand.vmem [shape: f32[1,4,1], index: 1, kind: input, shape index: {}]   ;;  %s303_s2 = inlined_call_operand.vmem [shape: f32[1,4,1], index: 2, kind: input, shape index: {}]   ;;  %s304_s3 = inlined_call_operand.hbm [shape: f32[2,4,256], index: 3, kind: output, shape index: {}]  }
   0x1   :  { %9 = vsyncpa [#allocation4], 0  ;;  %s249_s12 = smov [#allocation2]  }
   0x2   :  { %s15_s13 = sshll.u32 %s249_s12, 4  ;;  %s16_s13 = int_to_ptr.vmem [resolvable:$true] %s15_s13 }
   0x3   :  { %s213_s14 = scalar_lea.vmem %s16_s13, 256  ;;  %p218_p1 = scmp.lt.s32.totalorder %s16_s13, %s16_s13 }
   0x4   :  { %p214_p0 = scmp.ne.s32.totalorder %s16_s13, %s213_s14  ;;  %p219_p2 = scmp.lt.s32.totalorder %s213_s14, %s213_s14 }
   0x6   :  { %p220_p3 = por %p219_p2, %p218_p1 }
   0x8   :  { %p221_p4 = pnand %p220_p3, %p214_p0 }
   0xa   :  { %224 = shalt.err (!%p221_p4)
}
   0xb   :  { %s250_s15 = smov 128   ;;  %s251_s16 = smov 8  }
   0xc   :  { %21 = dma.hbm_to_vmem [thread:$0]  %s301_s0, 256, %s16_s13, [#allocation3], %s250_s15, %s250_s15, %s251_s16  }
   0xd   :  { %245 = dma.done.wait [#allocation3], 256  }
   0xe   :  { %246 = vsyncadd [#allocation3], 4294967040  ;;  %v252_v0 = vmov 0   ;;  %v139_v1 = vld [vmem:[%s302_s1] sm:$0xf]  ;;  %v30_v4 = vld [vmem:[#allocation2 + $0x8] sm:$0xff] }
   0xf   :  { %194 = vset.pattern.permute.xlu0 %v252_v0  ;;  %v154_v2 = vld [vmem:[%s303_s2] sm:$0xf]  ;;  %vm37_vm0 = vcmask 1043456   ;;  %v34_v6 = vcombine.high %v30_v4, %v30_v4  ;;  %s254_s0 = smov [#allocation5]  }
  0x10   :  { %142 = vperm.xlu0 %194, %v139_v1   ;;  %v29_v3 = vld [vmem:[#allocation2] sm:$0xff]  ;;  %v52_v9 = vsel %vm37_vm0, %v30_v4, 0.0  ;;  %s176_s1 = sshll.u32 %s254_s0, 4  ;;  %s177_s1 = int_to_ptr.vmem [resolvable:$true] %s176_s1 }
  0x11   :  { %v33_v5 = vcombine.high %v29_v3, %v29_v3  ;;  %v38_v7 = vsel %vm37_vm0, %v29_v3, 0.0  ;;  %v59_v10 = vsel %vm37_vm0, %v34_v6, 0.0  ;;  %v53_v13 = vrot.slane %v52_v9, 4  ;;  %s225_s2 = scalar_lea.vmem %s177_s1, 256  ;;  %p230_p6 = scmp.lt.s32.totalorder %s177_s1, %s177_s1 }
  0x12   :  { %v39_v11 = vrot.slane %v38_v7, 4  ;;  %v60_v14 = vrot.slane %v59_v10, 4  ;;  %p226_p5 = scmp.ne.s32.totalorder %s177_s1, %s225_s2  ;;  %p231_p7 = scmp.lt.s32.totalorder %s225_s2, %s225_s2 }
  0x13   :  { %v45_v8 = vsel %vm37_vm0, %v33_v5, 0.0  ;;  %v54_v17 = vadd.f32 %v53_v13, %v52_v9 }
  0x14   :  { %157 = vperm.xlu0 %194, %v154_v2   ;;  %v46_v12 = vrot.slane %v45_v8, 4  ;;  %v40_v15 = vadd.f32 %v39_v11, %v38_v7  ;;  %v61_v18 = vadd.f32 %v60_v14, %v59_v10  ;;  %p232_p8 = por %p231_p7, %p230_p6 }
  0x15   :  { %v55_v21 = vrot.slane %v54_v17, 2 }
  0x16   :  { %v47_v16 = vadd.f32 %v46_v12, %v45_v8  ;;  %v41_v19 = vrot.slane %v40_v15, 2  ;;  %v62_v22 = vrot.slane %v61_v18, 2  ;;  %p233_p9 = pnand %p232_p8, %p226_p5 }
  0x17   :  { %v56_v25 = vadd.f32 %v55_v21, %v54_v17  ;;  %v147_v21 = vlaneseq }
  0x18   :  { %v48_v20 = vrot.slane %v47_v16, 2  ;;  %v42_v23 = vadd.f32 %v41_v19, %v40_v15  ;;  %v63_v26 = vadd.f32 %v62_v22, %v61_v18  ;;  %v253_v19 = vmov 839922192  }
  0x19   :  { %v57_v29 = vrot.slane %v56_v25, 1 }
  0x1a   :  { %v49_v24 = vadd.f32 %v48_v20, %v47_v16  ;;  %v43_v27 = vrot.slane %v42_v23, 1  ;;  %v64_v30 = vrot.slane %v63_v26, 1  ;;  %v145_v20 = vunpack.c.l.s4 %v253_v19 }
  0x1b   :  { %v58_v33 = vadd.f32 %v57_v29, %v56_v25 }
  0x1c   :  { %v50_v28 = vrot.slane %v49_v24, 1  ;;  %v44_v31 = vadd.f32 %v43_v27, %v42_v23  ;;  %v65_v34 = vadd.f32 %v64_v30, %v63_v26  ;;  %v146_v25 = vunpack.c.0.s8 %v145_v20 }
  0x1d   :  { %v69_v37 = vmul.f32 0.25, %v58_v33  ;;  %v148_v26 = vshrl.u32 %v147_v21, 7 }
  0x1e   :  { %v51_v32 = vadd.f32 %v50_v28, %v49_v24  ;;  %v67_v35 = vmul.f32 0.25, %v44_v31  ;;  %v70_v38 = vmul.f32 0.25, %v65_v34 }
  0x1f   :  { %v149_v28 = vsub.s32 %v146_v25, %v148_v26 }
  0x20   :  { %v68_v36 = vmul.f32 0.25, %v51_v32  ;;  %v76_v40 = vcombine.low %v69_v37, %v70_v38 }
  0x22   :  { %v75_v39 = vcombine.low %v67_v35, %v68_v36  ;;  %v80_v42 = vsub.f32 %v30_v4, %v76_v40 }
  0x24   :  { %v79_v41 = vsub.f32 %v29_v3, %v75_v39  ;;  %v82_v44 = vmul.f32 %v80_v42, %v80_v42 }
  0x26   :  { %v81_v43 = vmul.f32 %v79_v41, %v79_v41  ;;  %v86_v46 = vcombine.high %v82_v44, %v82_v44  ;;  %v103_v48 = vsel %vm37_vm0, %v82_v44, 0.0 }
  0x27   :  { %v104_v52 = vrot.slane %v103_v48, 4 }
  0x28   :  { %v85_v45 = vcombine.high %v81_v43, %v81_v43  ;;  %v89_v47 = vsel %vm37_vm0, %v81_v43, 0.0  ;;  %v110_v51 = vsel %vm37_vm0, %v86_v46, 0.0 }
  0x29   :  { %v90_v50 = vrot.slane %v89_v47, 4  ;;  %v111_v54 = vrot.slane %v110_v51, 4  ;;  %v105_v56 = vadd.f32 %v104_v52, %v103_v48 }
  0x2a   :  { %v96_v49 = vsel %vm37_vm0, %v85_v45, 0.0 }
  0x2b   :  { %v97_v53 = vrot.slane %v96_v49, 4  ;;  %v91_v55 = vadd.f32 %v90_v50, %v89_v47  ;;  %v112_v58 = vadd.f32 %v111_v54, %v110_v51  ;;  %v106_v60 = vrot.slane %v105_v56, 2 }
  0x2d   :  { %v98_v57 = vadd.f32 %v97_v53, %v96_v49  ;;  %v92_v59 = vrot.slane %v91_v55, 2  ;;  %v113_v62 = vrot.slane %v112_v58, 2  ;;  %v107_v0 = vadd.f32 %v106_v60, %v105_v56 }
  0x2f   :  { %v99_v61 = vrot.slane %v98_v57, 2  ;;  %v93_v63 = vadd.f32 %v92_v59, %v91_v55  ;;  %v114_v2 = vadd.f32 %v113_v62, %v112_v58  ;;  %v108_v4 = vrot.slane %v107_v0, 1 }
  0x31   :  { %v100_v1 = vadd.f32 %v99_v61, %v98_v57  ;;  %v94_v3 = vrot.slane %v93_v63, 1  ;;  %v115_v6 = vrot.slane %v114_v2, 1  ;;  %v109_v8 = vadd.f32 %v108_v4, %v107_v0 }
  0x33   :  { %v101_v5 = vrot.slane %v100_v1, 1  ;;  %v95_v7 = vadd.f32 %v94_v3, %v93_v63  ;;  %v116_v10 = vadd.f32 %v115_v6, %v114_v2  ;;  %v119_v12 = vmul.f32 0.25, %v109_v8 }
  0x35   :  { %v102_v9 = vadd.f32 %v101_v5, %v100_v1  ;;  %v117_v11 = vmul.f32 0.25, %v95_v7  ;;  %v120_v14 = vmul.f32 0.25, %v116_v10  ;;  %v123_v16 = vadd.f32 1e-06, %v119_v12 }
  0x37   :  { %v118_v13 = vmul.f32 0.25, %v102_v9  ;;  %v121_v15 = vadd.f32 1e-06, %v117_v11  ;;  %v124_v18 = vadd.f32 1e-06, %v120_v14 }
  0x39   :  { %v122_v17 = vadd.f32 1e-06, %v118_v13  ;;  %197 = vrsqrt.f32 %v121_v15 }
  0x3a   :  { %199 = vrsqrt.f32 %v123_v16 }
  0x3b   :  { %201 = vrsqrt.f32 %v122_v17 }
  0x3c   :  { %203 = vrsqrt.f32 %v124_v18 }
  0x46   :  { %v198_v22 = vpop.eup %197 }
  0x47   :  { %v200_v23 = vpop.eup %199 }
  0x48   :  { %v202_v24 = vpop.eup %201 }
  0x49   :  { %v204_v27 = vpop.eup %203  ;;  %v133_v29 = vcombine.low %v198_v22, %v202_v24 }
  0x4a   :  { %v134_v30 = vcombine.low %v200_v23, %v204_v27 }
  0x4b   :  { %v137_v32 = vmul.f32 %v133_v29, %v79_v41 }
  0x4c   :  { %v138_v33 = vmul.f32 %v134_v30, %v80_v42 }
  0x8b   :  { %v143_v31 = vpop.permute.xlu0 %142 }
  0x8c   :  { %v150_v34 = vrot.slane %v143_v31, %v149_v28 }
  0x8e   :  { %v152_v36 = vmul.f32 %v150_v34, %v137_v32  ;;  %v153_v37 = vmul.f32 %v150_v34, %v138_v33 }
  0x8f   :  { %v158_v35 = vpop.permute.xlu0 %157 }
  0x90   :  { %v165_v38 = vrot.slane %v158_v35, %v149_v28 }
  0x92   :  { %v167_v39 = vadd.f32 %v165_v38, %v152_v36  ;;  %v168_v40 = vadd.f32 %v165_v38, %v153_v37 }
  0x94   :  { %169 = vst [vmem:[#allocation5] sm:$0xff] %v167_v39  ;;  %170 = vst [vmem:[#allocation5 + $0x8] sm:$0xff] %v168_v40 }
  0x95   :  { %236 = shalt.err (!%p233_p9)
}
  0x96   :  { %182 = dma.vmem_to_hbm [thread:$0]  %s177_s1, 256, %s304_s3, [#allocation4], %s250_s15, %s250_s15, %s251_s16  }
  0x97   :  { %247 = dma.done.wait [#allocation4], 256  }
  0x98   :  { %248 = vsyncadd [#allocation4], 4294967040 }
  0x99   :  { %186 = vsyncpa [#allocation3], 1 }
  0x9a   :  { %187 = vsyncpa [#allocation4], 1 }

</bundles_post_ra>
